<compile_context>
chip_gen: v6e
topology: v6e:2x2x1
jax: 0.10.0
libtpu: 0.0.40
codegen_flags: <defaults>
</compile_context>

<pallas_src>
import jax
import jax.numpy as jnp
from jax.experimental import pallas as pl
from jax.experimental.pallas import tpu as pltpu


def nonlinear_kernel(x_ref, w1_ref, b1_ref, w2_ref, b2_ref, o_ref):
    # x_ref : (tb, in_nc)    row-major batch tile
    # w1_ref: (in_nc, nc)    lane-dense, fully VMEM-resident every step
    # b1_ref: (1, nc)        lane-dense bias row
    # w2_ref: (nc, out_dim)  fully VMEM-resident
    # b2_ref: (1, out_dim)
    # o_ref : (tb, out_dim)  row-major output tile (masked vst on the 4-wide minor dim)
    h = jnp.dot(x_ref[...], w1_ref[...], preferred_element_type=jnp.float32)
    h = h + b1_ref[...]
    # LeakyReLU, PyTorch default negative_slope = 0.01 (max form: slope < 1).
    h = jnp.maximum(h, 0.01 * h)
    out = jnp.dot(h, w2_ref[...], preferred_element_type=jnp.float32)
    out = out + b2_ref[...]
    o_ref[...] = out.astype(o_ref.dtype)


def nonlinear_forward(x, w1, b1, w2, b2, *, tb=1024):
    """y = leaky_relu(x @ W1 + b1) @ W2 + b2 computed row-major on TPU.

    x : (B, in_nc)     w1: (in_nc, nc)    b1: (nc,)
    w2: (nc, out_dim)  b2: (out_dim,)     returns (B, out_dim)
    """
    B, in_nc = x.shape
    nc = w1.shape[1]
    out_dim = w2.shape[1]

    b1r = b1.reshape(1, nc)
    b2r = b2.reshape(1, out_dim)

    # Batch-tile selection. Rows land on the sublane axis, so a tile must either be a
    # multiple of 8 rows or cover the full batch. For mid-size batches we force >= 2
    # grid steps so v7x's two TensorCores both get work ("parallel" axis).
    if B > tb:
        tb_eff = tb                                   # tb is a multiple of 128
    elif B > 256:
        tb_eff = (((B + 1) // 2) + 7) // 8 * 8        # ~half the batch, multiple of 8
    else:
        tb_eff = B                                    # single step, block == full array
    grid = (pl.cdiv(B, tb_eff),)

    flops = 2 * B * (in_nc * nc + nc * out_dim)
    bytes_accessed = 4 * (B * in_nc + in_nc * nc + nc + nc * out_dim + out_dim
                          + B * out_dim)

    return pl.pallas_call(
        nonlinear_kernel,
        out_shape=jax.ShapeDtypeStruct((B, out_dim), x.dtype),
        grid_spec=pltpu.PrefetchScalarGridSpec(
            num_scalar_prefetch=0,
            grid=grid,
            in_specs=[
                pl.BlockSpec((tb_eff, in_nc), lambda i: (i, 0)),   # x batch tile
                pl.BlockSpec((in_nc, nc), lambda i: (0, 0)),       # W1 resident
                pl.BlockSpec((1, nc), lambda i: (0, 0)),           # b1 row
                pl.BlockSpec((nc, out_dim), lambda i: (0, 0)),     # W2 resident
                pl.BlockSpec((1, out_dim), lambda i: (0, 0)),      # b2 row
            ],
            out_specs=pl.BlockSpec((tb_eff, out_dim), lambda i: (i, 0)),
        ),
        compiler_params=pltpu.CompilerParams(
            dimension_semantics=("parallel",),
            vmem_limit_bytes=48 * 1024 * 1024,
        ),
        cost_estimate=pl.CostEstimate(
            flops=flops, transcendentals=0, bytes_accessed=bytes_accessed),
    )(x, w1, b1r, w2, b2r)


if __name__ == "__main__":
    # Module defaults: in_nc=6, nc=1600, out_nc=1, num_sheets=4 -> out_dim=4
    in_nc, nc, out_nc, num_sheets = 6, 1600, 1, 4
    out_dim = out_nc * num_sheets

    key = jax.random.PRNGKey(0)
    kx, kw1, kb1, kw2, kb2, kx2 = jax.random.split(key, 6)

    # Deterministic synthetic parameters (PyTorch Linear init ranges, pre-transposed
    # to the y = x @ W + b convention).
    bound1 = 1.0 / jnp.sqrt(in_nc)
    w1 = jax.random.uniform(kw1, (in_nc, nc), jnp.float32, -bound1, bound1)
    b1 = jax.random.uniform(kb1, (nc,), jnp.float32, -bound1, bound1)
    bound2 = 1.0 / jnp.sqrt(nc)
    w2 = jax.random.uniform(kw2, (nc, out_dim), jnp.float32, -bound2, bound2)
    b2 = jax.random.uniform(kb2, (out_dim,), jnp.float32, -bound2, bound2)

    def _reference(x):
        h = x @ w1 + b1
        h = jnp.where(h > 0, h, 0.01 * h)
        return h @ w2 + b2

    # Test 1: small batch -> single grid step (block == full array, no padding rules).
    batch = 16
    x = jax.random.normal(kx, (batch, in_nc), dtype=jnp.float32)
    out = jax.block_until_ready(nonlinear_forward(x, w1, b1, w2, b2))
    assert out.shape == (batch, out_dim)
    assert jnp.allclose(out, _reference(x), atol=1e-4, rtol=1e-4), \
        "mismatch vs reference (small B)"

    # Test 2: mid-size ragged batch, default tile -> 2 parallel steps, masked partial
    # trailing block (no wrapper-side padding).
    batch2 = 300
    x2 = jax.random.normal(kx2, (batch2, in_nc), dtype=jnp.float32)
    out2 = jax.block_until_ready(nonlinear_forward(x2, w1, b1, w2, b2))
    assert out2.shape == (batch2, out_dim)
    assert jnp.allclose(out2, _reference(x2), atol=1e-4, rtol=1e-4), \
        "mismatch vs reference (2-step)"

    # Test 3: force the B > tb tiling path (3 grid steps, partial last block).
    out3 = jax.block_until_ready(nonlinear_forward(x2, w1, b1, w2, b2, tb=128))
    assert out3.shape == (batch2, out_dim)
    assert jnp.allclose(out3, _reference(x2), atol=1e-4, rtol=1e-4), \
        "mismatch vs reference (tiled B)"

    print("KERNEL_OK")
</pallas_src>

<mosaic_0001>
module attributes {stable_mosaic.version = 11 : i64} {
  func.func @nonlinear_kernel(%arg0: i32, %arg1: memref<16x6xf32, #tpu.memory_space<vmem>>, %arg2: memref<6x1600xf32, #tpu.memory_space<vmem>>, %arg3: memref<1x1600xf32, #tpu.memory_space<vmem>>, %arg4: memref<1600x4xf32, #tpu.memory_space<vmem>>, %arg5: memref<1x4xf32, #tpu.memory_space<vmem>>, %arg6: memref<16x4xf32, #tpu.memory_space<vmem>>) attributes {dimension_semantics = [#tpu.dimension_semantics<parallel>], iteration_bounds = array<i64: 1>, scalar_prefetch = 0 : i64, scratch_operands = 0 : i64, tpu.core_type = #tpu.core_type<tc>, window_params = [{transform_indices = @transform_0, window_bounds = array<i64: 16, 6>}, {pipeline_mode = #tpu.pipeline_mode<synchronous>, transform_indices = @transform_1, window_bounds = array<i64: 6, 1600>}, {pipeline_mode = #tpu.pipeline_mode<synchronous>, transform_indices = @transform_2, window_bounds = array<i64: 1, 1600>}, {pipeline_mode = #tpu.pipeline_mode<synchronous>, transform_indices = @transform_3, window_bounds = array<i64: 1600, 4>}, {pipeline_mode = #tpu.pipeline_mode<synchronous>, transform_indices = @transform_4, window_bounds = array<i64: 1, 4>}, {transform_indices = @transform_5, window_bounds = array<i64: 16, 4>}]} {
    %c0 = arith.constant 0 : index
    %c0_0 = arith.constant 0 : index
    %0 = vector.load %arg1[%c0, %c0_0] : memref<16x6xf32, #tpu.memory_space<vmem>>, vector<16x6xf32>
    %c0_1 = arith.constant 0 : index
    %c0_2 = arith.constant 0 : index
    %1 = vector.load %arg2[%c0_1, %c0_2] : memref<6x1600xf32, #tpu.memory_space<vmem>>, vector<6x1600xf32>
    %cst = arith.constant dense<0.000000e+00> : vector<16x1600xf32>
    %2 = tpu.matmul %0, %1, %cst {dimension_numbers = #tpu.dot_dimension_numbers<[1], [0], [0], [1], [0, 0, 1, 1], [], []>} : vector<16x6xf32>, vector<6x1600xf32>, vector<16x1600xf32> -> vector<16x1600xf32>
    %c0_3 = arith.constant 0 : index
    %c0_4 = arith.constant 0 : index
    %3 = vector.load %arg3[%c0_3, %c0_4] : memref<1x1600xf32, #tpu.memory_space<vmem>>, vector<1x1600xf32>
    %4 = vector.broadcast %3 : vector<1x1600xf32> to vector<16x1600xf32>
    %5 = arith.addf %2, %4 : vector<16x1600xf32>
    %cst_5 = arith.constant 0.00999999977 : f32
    %6 = vector.broadcast %cst_5 : f32 to vector<16x1600xf32>
    %7 = arith.mulf %6, %5 : vector<16x1600xf32>
    %8 = arith.maximumf %5, %7 : vector<16x1600xf32>
    %c0_6 = arith.constant 0 : index
    %c0_7 = arith.constant 0 : index
    %9 = vector.load %arg4[%c0_6, %c0_7] : memref<1600x4xf32, #tpu.memory_space<vmem>>, vector<1600x4xf32>
    %cst_8 = arith.constant dense<0.000000e+00> : vector<16x4xf32>
    %10 = tpu.matmul %8, %9, %cst_8 {dimension_numbers = #tpu.dot_dimension_numbers<[1], [0], [0], [1], [0, 0, 1, 1], [], []>} : vector<16x1600xf32>, vector<1600x4xf32>, vector<16x4xf32> -> vector<16x4xf32>
    %c0_9 = arith.constant 0 : index
    %c0_10 = arith.constant 0 : index
    %11 = vector.load %arg5[%c0_9, %c0_10] : memref<1x4xf32, #tpu.memory_space<vmem>>, vector<1x4xf32>
    %12 = vector.broadcast %11 : vector<1x4xf32> to vector<16x4xf32>
    %13 = arith.addf %10, %12 : vector<16x4xf32>
    %c0_11 = arith.constant 0 : index
    %c0_12 = arith.constant 0 : index
    %14 = vector.load %arg6[%c0_11, %c0_12] : memref<16x4xf32, #tpu.memory_space<vmem>>, vector<16x4xf32>
    tpu.vector_store %arg6[%c0_11, %c0_12], %13 {strides = array<i32>} : memref<16x4xf32, #tpu.memory_space<vmem>>, vector<16x4xf32>,
    return
  }
  func.func @transform_0(%arg0: i32) -> (i32, i32) {
    %c0_i32 = arith.constant 0 : i32
    %c0_i32_0 = arith.constant 0 : i32
    return %arg0, %c0_i32 : i32, i32
  }
  func.func @transform_1(%arg0: i32) -> (i32, i32) {
    %c0_i32 = arith.constant 0 : i32
    %c0_i32_0 = arith.constant 0 : i32
    %c0_i32_1 = arith.constant 0 : i32
    return %c0_i32, %c0_i32_0 : i32, i32
  }
  func.func @transform_2(%arg0: i32) -> (i32, i32) {
    %c0_i32 = arith.constant 0 : i32
    %c0_i32_0 = arith.constant 0 : i32
    %c0_i32_1 = arith.constant 0 : i32
    return %c0_i32, %c0_i32_0 : i32, i32
  }
  func.func @transform_3(%arg0: i32) -> (i32, i32) {
    %c0_i32 = arith.constant 0 : i32
    %c0_i32_0 = arith.constant 0 : i32
    %c0_i32_1 = arith.constant 0 : i32
    return %c0_i32, %c0_i32_0 : i32, i32
  }
  func.func @transform_4(%arg0: i32) -> (i32, i32) {
    %c0_i32 = arith.constant 0 : i32
    %c0_i32_0 = arith.constant 0 : i32
    %c0_i32_1 = arith.constant 0 : i32
    return %c0_i32, %c0_i32_0 : i32, i32
  }
  func.func @transform_5(%arg0: i32) -> (i32, i32) {
    %c0_i32 = arith.constant 0 : i32
    %c0_i32_0 = arith.constant 0 : i32
    return %arg0, %c0_i32 : i32, i32
  }
}

</mosaic_0001>

<bundles_post_ra>
// kernel: tpu_custom_call.1
= control target key start
LH: loop header
LB: loop body
LE: loop exit
PB: predicated region body
PF: predicated region fallthrough
CT: control target
= control target key end

     0   :  { %vm111_vm0 = vcmask 1045504   ;;  %vm104_vm1 = vcmask 48128   ;;  %v1782_v2 = vmov 0.0   ;;  %vm947_vm2 = vcmask 523264   ;;  %s2622_s1 = inlined_call_operand.vmem [shape: f32[6,1600], index: 1, kind: input, shape index: {}]   ;;  %s2623_s0 = inlined_call_operand.vmem [shape: f32[16,6], index: 0, kind: input, shape index: {}]   ;;  %s2624_s3 = inlined_call_operand.vmem [shape: f32[1600,4], index: 3, kind: input, shape index: {}]   ;;  %s2625_s2 = inlined_call_operand.vmem [shape: f32[1,1600], index: 2, kind: input, shape index: {}]   ;;  %s2626_s4 = inlined_call_operand.vmem [shape: f32[1,4], index: 4, kind: input, shape index: {}]   ;;  %s2627_s5 = inlined_call_operand.vmem [shape: f32[16,4], index: 5, kind: output, shape index: {}]  }
   0x1   :  { %v23_v0 = vld [vmem:[%s2622_s1 + $0x8] sm:$0x3f]  ;;  %v22_v1 = vld [vmem:[%s2622_s1] sm:$0x3f]  ;;  %215 = vmatprep.mubr.f32.mxu0 %v1782_v2  ;;  %v25_v3 = vld [vmem:[%s2622_s1 + $0x18] sm:$0x3f]  ;;  %292 = vmatprep.mubr.f32.mxu1 %v1782_v2 }
   0x2   :  { %1486 = vmatprep.subr.msk.mxu0 %vm111_vm0, %v23_v0  ;;  %1490 = vmatprep.subr.msk.mxu1 %vm111_vm0, %v25_v3  ;;  %v20_v4 = vld [vmem:[%s2623_s0] sm:$0xff]  ;;  %v24_v5 = vld [vmem:[%s2622_s1 + $0x10] sm:$0x3f]  ;;  %v27_v6 = vld [vmem:[%s2622_s1 + $0x28] sm:$0x3f]  ;;  %vm1479_vm3 = vcmask 31744  }
   0x3   :  { %1487 = vmatpush1.msk.msra.mxu0 %vm111_vm0, %v22_v1  ;;  %1491 = vmatpush1.msk.msra.mxu1 %vm111_vm0, %v24_v5  ;;  %v29_v7 = vld [vmem:[%s2622_s1 + $0x38] sm:$0x3f]  ;;  %v26_v8 = vld [vmem:[%s2622_s1 + $0x20] sm:$0x3f]  ;;  %v28_v9 = vld [vmem:[%s2622_s1 + $0x30] sm:$0x3f] }
   0x4   :  { %1488 = vmatmul.mubr.msk.f32.vlgmr.msra.gmra.mxu0 %vm104_vm1, %v20_v4  ;;  %1492 = vmatmul.mubr.msk.f32.vlgmr.msra.gmra.mxu1 %vm104_vm1, %v20_v4  ;;  %v21_v10 = vld [vmem:[%s2623_s0 + $0x8] sm:$0xff]  ;;  %v33_v12 = vld [vmem:[%s2622_s1 + $0x58] sm:$0x3f]  ;;  %v30_v13 = vld [vmem:[%s2622_s1 + $0x40] sm:$0x3f] }
   0x5   :  { %221 = vmatprep.mubr.f32.mxu0 %v1782_v2  ;;  %298 = vmatprep.mubr.f32.mxu1 %v1782_v2  ;;  %v31_v11 = vld [vmem:[%s2622_s1 + $0x48] sm:$0x3f]  ;;  %v32_v14 = vld [vmem:[%s2622_s1 + $0x50] sm:$0x3f]  ;;  %v34_v15 = vld [vmem:[%s2622_s1 + $0x60] sm:$0x3f] }
   0x6   :  { %1494 = vmatprep.subr.msk.mxu0 %vm111_vm0, %v27_v6  ;;  %1498 = vmatprep.subr.msk.mxu1 %vm111_vm0, %v29_v7  ;;  %v771_v16 = vld [vmem:[%s2624_s3 + $0xf8] sm:$0xff]  ;;  %v770_v19 = vld [vmem:[%s2624_s3 + $0xf0] sm:$0xff]  ;;  %v769_v21 = vld [vmem:[%s2624_s3 + $0xe8] sm:$0xff] }
   0x7   :  { %1495 = vmatpush1.msk.msra.mxu0 %vm111_vm0, %v26_v8  ;;  %1499 = vmatpush1.msk.msra.mxu1 %vm111_vm0, %v28_v9  ;;  %v755_v17 = vld [vmem:[%s2624_s3 + $0x78] sm:$0xff]  ;;  %v754_v20 = vld [vmem:[%s2624_s3 + $0x70] sm:$0xff]  ;;  %v753_v22 = vld [vmem:[%s2624_s3 + $0x68] sm:$0xff] }
   0x8   :  { %1489 = vmatmul.mubr.msk.f32.gmra.mxu0 %vm104_vm1, %v21_v10  ;;  %1493 = vmatmul.mubr.msk.f32.gmra.mxu1 %vm104_vm1, %v21_v10  ;;  %v803_v18 = vld [vmem:[%s2624_s3 + $0x1f8] sm:$0xff]  ;;  %v768_v23 = vld [vmem:[%s2624_s3 + $0xe0] sm:$0xff]  ;;  %v802_v26 = vld [vmem:[%s2624_s3 + $0x1f0] sm:$0xff] }
   0x9   :  { %369 = vmatprep.mubr.f32.mxu0 %v1782_v2  ;;  %446 = vmatprep.mubr.f32.mxu1 %v1782_v2  ;;  %v787_v24 = vld [vmem:[%s2624_s3 + $0x178] sm:$0xff]  ;;  %v752_v25 = vld [vmem:[%s2624_s3 + $0x60] sm:$0xff]  ;;  %v786_v28 = vld [vmem:[%s2624_s3 + $0x170] sm:$0xff] }
   0xa   :  { %1502 = vmatprep.subr.msk.mxu0 %vm111_vm0, %v31_v11  ;;  %1506 = vmatprep.subr.msk.mxu1 %vm111_vm0, %v33_v12  ;;  %v767_v27 = vld [vmem:[%s2624_s3 + $0xd8] sm:$0xff]  ;;  %v801_v30 = vld [vmem:[%s2624_s3 + $0x1e8] sm:$0xff]  ;;  %v766_v31 = vld [vmem:[%s2624_s3 + $0xd0] sm:$0xff] }
   0xb   :  { %v751_v29 = vld [vmem:[%s2624_s3 + $0x58] sm:$0xff]  ;;  %v785_v32 = vld [vmem:[%s2624_s3 + $0x168] sm:$0xff]  ;;  %v750_v33 = vld [vmem:[%s2624_s3 + $0x50] sm:$0xff] }
   0xc   :  { %1496 = vmatmul.mubr.msk.f32.vlgmr.msra.gmra.mxu0 %vm104_vm1, %v20_v4  ;;  %1500 = vmatmul.mubr.msk.f32.vlgmr.msra.gmra.mxu1 %vm104_vm1, %v20_v4  ;;  %v800_v34 = vld [vmem:[%s2624_s3 + $0x1e0] sm:$0xff]  ;;  %v765_v35 = vld [vmem:[%s2624_s3 + $0xc8] sm:$0xff]  ;;  %v799_v38 = vld [vmem:[%s2624_s3 + $0x1d8] sm:$0xff] }
   0xd   :  { %375 = vmatprep.mubr.f32.mxu0 %v1782_v2  ;;  %452 = vmatprep.mubr.f32.mxu1 %v1782_v2  ;;  %v784_v36 = vld [vmem:[%s2624_s3 + $0x160] sm:$0xff]  ;;  %v749_v37 = vld [vmem:[%s2624_s3 + $0x48] sm:$0xff]  ;;  %v783_v40 = vld [vmem:[%s2624_s3 + $0x158] sm:$0xff] }
   0xe   :  { %1503 = vmatpush1.msk.msra.mxu0 %vm111_vm0, %v30_v13  ;;  %1507 = vmatpush1.msk.msra.mxu1 %vm111_vm0, %v32_v14  ;;  %v764_v39 = vld [vmem:[%s2624_s3 + $0xc0] sm:$0xff]  ;;  %v798_v42 = vld [vmem:[%s2624_s3 + $0x1d0] sm:$0xff]  ;;  %v763_v43 = vld [vmem:[%s2624_s3 + $0xb8] sm:$0xff] }
   0xf   :  { %1757 = vmatprep.subr.msk.mxu0 %vm111_vm0, %v34_v15  ;;  %1519 = vmatprep.subr.mxu1 %v771_v16  ;;  %v748_v41 = vld [vmem:[%s2624_s3 + $0x40] sm:$0xff]  ;;  %v782_v44 = vld [vmem:[%s2624_s3 + $0x150] sm:$0xff]  ;;  %v747_v45 = vld [vmem:[%s2624_s3 + $0x38] sm:$0xff] }
  0x10   :  { %1497 = vmatmul.mubr.msk.f32.gmra.mxu0 %vm104_vm1, %v21_v10  ;;  %1501 = vmatmul.mubr.msk.f32.gmra.mxu1 %vm104_vm1, %v21_v10  ;;  %v797_v46 = vld [vmem:[%s2624_s3 + $0x1c8] sm:$0xff]  ;;  %v762_v47 = vld [vmem:[%s2624_s3 + $0xb0] sm:$0xff]  ;;  %v796_v50 = vld [vmem:[%s2624_s3 + $0x1c0] sm:$0xff] }
  0x11   :  { %523 = vmatprep.mubr.f32.mxu0 %v1782_v2  ;;  %600 = vmatprep.mubr.f32.mxu1 %v1782_v2  ;;  %v781_v48 = vld [vmem:[%s2624_s3 + $0x148] sm:$0xff]  ;;  %v746_v49 = vld [vmem:[%s2624_s3 + $0x30] sm:$0xff]  ;;  %v780_v52 = vld [vmem:[%s2624_s3 + $0x140] sm:$0xff] }
  0x12   :  { %v761_v51 = vld [vmem:[%s2624_s3 + $0xa8] sm:$0xff]  ;;  %v795_v54 = vld [vmem:[%s2624_s3 + $0x1b8] sm:$0xff]  ;;  %v760_v55 = vld [vmem:[%s2624_s3 + $0xa0] sm:$0xff] }
  0x13   :  { %v745_v53 = vld [vmem:[%s2624_s3 + $0x28] sm:$0xff]  ;;  %v779_v56 = vld [vmem:[%s2624_s3 + $0x138] sm:$0xff]  ;;  %v794_v57 = vld [vmem:[%s2624_s3 + $0x1b0] sm:$0xff] }
  0x14   :  { %1504 = vmatmul.mubr.msk.f32.vlgmr.msra.gmra.mxu0 %vm104_vm1, %v20_v4  ;;  %1508 = vmatmul.mubr.msk.f32.vlgmr.msra.gmra.mxu1 %vm104_vm1, %v20_v4  ;;  %v778_v58 = vld [vmem:[%s2624_s3 + $0x130] sm:$0xff]  ;;  %v793_v59 = vld [vmem:[%s2624_s3 + $0x1a8] sm:$0xff]  ;;  %v744_v61 = vld [vmem:[%s2624_s3 + $0x20] sm:$0xff] }
  0x15   :  { %529 = vmatprep.mubr.f32.mxu0 %v1782_v2  ;;  %606 = vmatprep.mubr.f32.mxu1 %v1782_v2  ;;  %v777_v60 = vld [vmem:[%s2624_s3 + $0x128] sm:$0xff]  ;;  %v792_v62 = vld [vmem:[%s2624_s3 + $0x1a0] sm:$0xff]  ;;  %v759_v63 = vld [vmem:[%s2624_s3 + $0x98] sm:$0xff] }
  0x16   :  { %1758 = vmatpush3.msk.msra.mxu0 %vm111_vm0, %v34_v15  ;;  %1520 = vmatpush3.msra.mxu1 %v755_v17  ;;  %v776_v0 = vld [vmem:[%s2624_s3 + $0x120] sm:$0xff]  ;;  %v743_v1 = vld [vmem:[%s2624_s3 + $0x18] sm:$0xff]  ;;  %v758_v3 = vld [vmem:[%s2624_s3 + $0x90] sm:$0xff] }
  0x17   :  { %1557 = vmatprep.subr.mxu0 %v803_v18  ;;  %1521 = vmatprep.subr.mxu1 %v770_v19  ;;  %v791_v2 = vld [vmem:[%s2624_s3 + $0x198] sm:$0xff]  ;;  %v742_v5 = vld [vmem:[%s2624_s3 + $0x10] sm:$0xff]  ;;  %v757_v7 = vld [vmem:[%s2624_s3 + $0x88] sm:$0xff]  ;;  %v39_v18 = vlaneseq }
  0x18   :  { %1505 = vmatmul.mubr.msk.f32.gmra.mxu0 %vm104_vm1, %v21_v10  ;;  %1509 = vmatmul.mubr.msk.f32.gmra.mxu1 %vm104_vm1, %v21_v10  ;;  %v790_v6 = vld [vmem:[%s2624_s3 + $0x190] sm:$0xff]  ;;  %v741_v9 = vld [vmem:[%s2624_s3 + $0x8] sm:$0xff]  ;;  %v756_v11 = vld [vmem:[%s2624_s3 + $0x80] sm:$0xff] }
  0x19   :  { %1759 = vmatprep.mubr.msk.f32.mxu0 %vm104_vm1, %v20_v4  ;;  %1522 = vmatpush3.msra.mxu1 %v754_v20  ;;  %v775_v4 = vld [vmem:[%s2624_s3 + $0x118] sm:$0xff]  ;;  %v774_v8 = vld [vmem:[%s2624_s3 + $0x110] sm:$0xff]  ;;  %v773_v12 = vld [vmem:[%s2624_s3 + $0x108] sm:$0xff]  ;;  %v2084_v19 = vshrl.u32 %v39_v18, 7 }
  0x1a   :  { %1523 = vmatprep.subr.mxu1 %v769_v21  ;;  %v740_v13 = vld [vmem:[%s2624_s3] sm:$0xff]  ;;  %v835_v16 = vld [vmem:[%s2624_s3 + $0x2f8] sm:$0xff] }
  0x1b   :  { %1524 = vmatpush3.msra.mxu1 %v753_v22  ;;  %v788_v14 = vld [vmem:[%s2624_s3 + $0x180] sm:$0xff]  ;;  %v867_v17 = vld [vmem:[%s2624_s3 + $0x3f8] sm:$0xff]  ;;  %v41_v20 = vsub.s32 0, %v2084_v19  ;;  %v49_v21 = vsub.s32 2, %v2084_v19 }
  0x1c   :  { %1760 = vmatmul.mubr.msk.f32.vlgmr.msra.gmra.mxu0 %vm104_vm1, %v21_v10  ;;  %1525 = vmatprep.subr.mxu1 %v768_v23  ;;  %v789_v10 = vld [vmem:[%s2624_s3 + $0x188] sm:$0xff]  ;;  %v772_v15 = vld [vmem:[%s2624_s3 + $0x100] sm:$0xff]  ;;  %v45_v23 = vsub.s32 1, %v2084_v19 }
  0x1d   :  { %1558 = vmatpush3.msra.mxu0 %v787_v24  ;;  %1526 = vmatpush3.msra.mxu1 %v752_v25  ;;  %v2091_v22 = vld [vmem:[%s2625_s2] sm:$0xff]  ;;  %v53_v24 = vsub.s32 3, %v2084_v19 }
  0x1e   :  { %1559 = vmatprep.subr.mxu0 %v802_v26  ;;  %1527 = vmatprep.subr.mxu1 %v767_v27  ;;  %v2098_v25 = vrot.slane %v2091_v22, %v41_v20  ;;  %v2103_v26 = vrot.slane %v2091_v22, %v49_v21  ;;  %v2108_v27 = vrot.slane %v2091_v22, %v45_v23 }
  0x1f   :  { %1560 = vmatpush3.msra.mxu0 %v786_v28  ;;  %1528 = vmatpush3.msra.mxu1 %v751_v29  ;;  %v2113_v28 = vrot.slane %v2091_v22, %v53_v24 }
  0x20   :  { %1561 = vmatprep.subr.mxu0 %v801_v30  ;;  %1529 = vmatprep.subr.mxu1 %v766_v31 }
  0x21   :  { %1562 = vmatpush3.msra.mxu0 %v785_v32  ;;  %1530 = vmatpush3.msra.mxu1 %v750_v33 }
  0x22   :  { %1563 = vmatprep.subr.mxu0 %v800_v34  ;;  %1531 = vmatprep.subr.mxu1 %v765_v35 }
  0x23   :  { %1564 = vmatpush3.msra.mxu0 %v784_v36  ;;  %1532 = vmatpush3.msra.mxu1 %v749_v37 }
  0x24   :  { %1565 = vmatprep.subr.mxu0 %v799_v38  ;;  %1533 = vmatprep.subr.mxu1 %v764_v39 }
  0x25   :  { %1566 = vmatpush3.msra.mxu0 %v783_v40  ;;  %1534 = vmatpush3.msra.mxu1 %v748_v41 }
  0x26   :  { %1567 = vmatprep.subr.mxu0 %v798_v42  ;;  %1535 = vmatprep.subr.mxu1 %v763_v43 }
  0x27   :  { %1568 = vmatpush3.msra.mxu0 %v782_v44  ;;  %1536 = vmatpush3.msra.mxu1 %v747_v45  ;;  %v819_v45 = vld [vmem:[%s2624_s3 + $0x278] sm:$0xff] }
  0x28   :  { %1569 = vmatprep.subr.mxu0 %v797_v46  ;;  %1537 = vmatprep.subr.mxu1 %v762_v47  ;;  %v851_v46 = vld [vmem:[%s2624_s3 + $0x378] sm:$0xff]  ;;  %v834_v47 = vld [vmem:[%s2624_s3 + $0x2f0] sm:$0xff] }
  0x29   :  { %1570 = vmatpush3.msra.mxu0 %v781_v48  ;;  %1538 = vmatpush3.msra.mxu1 %v746_v49  ;;  %v866_v48 = vld [vmem:[%s2624_s3 + $0x3f0] sm:$0xff] }
  0x2a   :  { %1571 = vmatprep.subr.mxu0 %v796_v50  ;;  %1539 = vmatprep.subr.mxu1 %v761_v51  ;;  %v818_v49 = vld [vmem:[%s2624_s3 + $0x270] sm:$0xff]  ;;  %v833_v51 = vld [vmem:[%s2624_s3 + $0x2e8] sm:$0xff] }
  0x2b   :  { %1572 = vmatpush3.msra.mxu0 %v780_v52  ;;  %1540 = vmatpush3.msra.mxu1 %v745_v53  ;;  %v850_v50 = vld [vmem:[%s2624_s3 + $0x370] sm:$0xff]  ;;  %v865_v52 = vld [vmem:[%s2624_s3 + $0x3e8] sm:$0xff] }
  0x2c   :  { %1573 = vmatprep.subr.mxu0 %v795_v54  ;;  %1541 = vmatprep.subr.mxu1 %v760_v55  ;;  %v817_v54 = vld [vmem:[%s2624_s3 + $0x268] sm:$0xff] }
  0x2d   :  { %1574 = vmatpush3.msra.mxu0 %v779_v56  ;;  %1542 = vmatpush3.msra.mxu1 %v744_v61  ;;  %v849_v55 = vld [vmem:[%s2624_s3 + $0x368] sm:$0xff]  ;;  %v832_v56 = vld [vmem:[%s2624_s3 + $0x2e0] sm:$0xff]  ;;  %v831_v61 = vld [vmem:[%s2624_s3 + $0x2d8] sm:$0xff] }
  0x2e   :  { %1575 = vmatprep.subr.mxu0 %v794_v57  ;;  %1543 = vmatprep.subr.mxu1 %v759_v63  ;;  %v864_v57 = vld [vmem:[%s2624_s3 + $0x3e0] sm:$0xff] }
  0x2f   :  { %1576 = vmatpush3.msra.mxu0 %v778_v58  ;;  %1544 = vmatpush3.msra.mxu1 %v743_v1  ;;  %v816_v58 = vld [vmem:[%s2624_s3 + $0x260] sm:$0xff]  ;;  %v847_v1 = vld [vmem:[%s2624_s3 + $0x358] sm:$0xff] }
  0x30   :  { %1577 = vmatprep.subr.mxu0 %v793_v59  ;;  %1545 = vmatprep.subr.mxu1 %v758_v3  ;;  %v848_v59 = vld [vmem:[%s2624_s3 + $0x360] sm:$0xff]  ;;  %v862_v3 = vld [vmem:[%s2624_s3 + $0x3d0] sm:$0xff] }
  0x31   :  { %1578 = vmatpush3.msra.mxu0 %v777_v60  ;;  %1546 = vmatpush3.msra.mxu1 %v742_v5  ;;  %v846_v5 = vld [vmem:[%s2624_s3 + $0x350] sm:$0xff] }
  0x32   :  { %1579 = vmatprep.subr.mxu0 %v792_v62  ;;  %1547 = vmatprep.subr.mxu1 %v757_v7  ;;  %v863_v62 = vld [vmem:[%s2624_s3 + $0x3d8] sm:$0xff] }
  0x33   :  { %1580 = vmatpush3.msra.mxu0 %v776_v0  ;;  %1548 = vmatpush3.msra.mxu1 %v741_v9  ;;  %v815_v0 = vld [vmem:[%s2624_s3 + $0x258] sm:$0xff]  ;;  %v861_v9 = vld [vmem:[%s2624_s3 + $0x3c8] sm:$0xff] }
  0x34   :  { %1581 = vmatprep.subr.mxu0 %v791_v2  ;;  %1549 = vmatprep.subr.mxu1 %v756_v11  ;;  %v830_v2 = vld [vmem:[%s2624_s3 + $0x2d0] sm:$0xff]  ;;  %v813_v11 = vld [vmem:[%s2624_s3 + $0x248] sm:$0xff] }
  0x35   :  { %1582 = vmatpush3.msra.mxu0 %v775_v4  ;;  %1550 = vmatpush3.msra.mxu1 %v740_v13  ;;  %v814_v4 = vld [vmem:[%s2624_s3 + $0x250] sm:$0xff]  ;;  %v61_v13 = vsub.s32 5, %v2084_v19 }
  0x36   :  { %1583 = vmatprep.subr.mxu0 %v790_v6  ;;  %1595 = vmatprep.subr.mxu1 %v835_v16 }
  0x37   :  { %1584 = vmatpush3.msra.mxu0 %v774_v8  ;;  %v829_v8 = vld [vmem:[%s2624_s3 + $0x2c8] sm:$0xff] }
  0x38   :  { %1585 = vmatprep.subr.mxu0 %v789_v10 }
  0x39   :  { %1586 = vmatpush3.msra.mxu0 %v773_v12  ;;  %v845_v12 = vld [vmem:[%s2624_s3 + $0x348] sm:$0xff] }
  0x3a   :  { %1587 = vmatprep.subr.mxu0 %v788_v14  ;;  %v828_v14 = vld [vmem:[%s2624_s3 + $0x2c0] sm:$0xff] }
  0x3b   :  { %1588 = vmatpush3.msra.mxu0 %v772_v15  ;;  %v860_v15 = vld [vmem:[%s2624_s3 + $0x3c0] sm:$0xff] }
  0x3c   :  { %1633 = vmatprep.subr.mxu0 %v867_v17 }
  0xc4   :  { %v217_v29 = vpop.f32.mrf.mxu0  ;;  %v294_v30 = vpop.f32.mrf.mxu1 }
  0xc5   :  { %v218_v31 = vadd.f32 %v217_v29, %v2098_v25  ;;  %v295_v32 = vadd.f32 %v294_v30, %v2103_v26  ;;  %v859_v30 = vld [vmem:[%s2624_s3 + $0x3b8] sm:$0xff] }
  0xc6   :  { %v219_v33 = vpop.f32.mrf.mxu0  ;;  %v296_v34 = vpop.f32.mrf.mxu1 }
  0xc7   :  { %v690_v35 = vmul.f32 0.01, %v295_v32  ;;  %v220_v36 = vadd.f32 %v219_v33, %v2108_v27  ;;  %v297_v37 = vadd.f32 %v296_v34, %v2113_v28  ;;  %v688_v38 = vmul.f32 0.01, %v218_v31 }
  0xc8   :  { %v223_v53 = vpop.f32.mrf.mxu0  ;;  %v300_v60 = vpop.f32.mrf.mxu1  ;;  %v2239_v33 = vrot.slane %v2091_v22, %v61_v13  ;;  %v821_v13 = vld [vmem:[%s2624_s3 + $0x288] sm:$0xff] }
  0xc9   :  { %v689_v39 = vmul.f32 0.01, %v220_v36  ;;  %v691_v40 = vmul.f32 0.01, %v297_v37  ;;  %v716_v41 = vmax.f32 %v295_v32, %v690_v35  ;;  %v714_v44 = vmax.f32 %v218_v31, %v688_v38  ;;  %v811_v32 = vld [vmem:[%s2624_s3 + $0x238] sm:$0xff] }
  0xca   :  { %v225_v63 = vpop.f32.mrf.mxu0  ;;  %v302_v7 = vpop.f32.mrf.mxu1  ;;  %v2195_v10 = vadd.f32 %v223_v53, %v2098_v25  ;;  %v812_v25 = vld [vmem:[%s2624_s3 + $0x240] sm:$0xff]  ;;  %v2223_v29 = vadd.f32 %v300_v60, %v2103_v26  ;;  %v843_v26 = vld [vmem:[%s2624_s3 + $0x338] sm:$0xff] }
  0xcb   :  { %v715_v42 = vmax.f32 %v220_v36, %v689_v39  ;;  %v717_v43 = vmax.f32 %v297_v37, %v691_v40  ;;  %v2186_v6 = vadd.f32 %v225_v63, %v2108_v27  ;;  %v2211_v16 = vadd.f32 %v302_v7, %v2113_v28  ;;  %v844_v27 = vld [vmem:[%s2624_s3 + $0x340] sm:$0xff]  ;;  %v827_v28 = vld [vmem:[%s2624_s3 + $0x2b8] sm:$0xff]  ;;  %v826_v36 = vld [vmem:[%s2624_s3 + $0x2b0] sm:$0xff] }
  0xcc   :  { %v2213_v17 = vpop.f32.mrf.mxu0  ;;  %v701_v31 = vmul.f32 0.01, %v2195_v10  ;;  %v448_v34 = vpop.f32.mrf.mxu1  ;;  %v858_v37 = vld [vmem:[%s2624_s3 + $0x3b0] sm:$0xff]  ;;  %v69_v39 = vsub.s32 7, %v2084_v19  ;;  %v824_v53 = vld [vmem:[%s2624_s3 + $0x2a0] sm:$0xff]  ;;  %v823_v63 = vld [vmem:[%s2624_s3 + $0x298] sm:$0xff] }
  0xcd   :  { %1018 = vmatprep.mubr.f32.mxu1 %v715_v42  ;;  %1093 = vmatprep.mubr.f32.mxu0 %v717_v43  ;;  %v702_v18 = vmul.f32 0.01, %v2186_v6  ;;  %v704_v35 = vmul.f32 0.01, %v2211_v16  ;;  %v810_v42 = vld [vmem:[%s2624_s3 + $0x230] sm:$0xff]  ;;  %v856_v60 = vld [vmem:[%s2624_s3 + $0x3a0] sm:$0xff] }
  0xce   :  { %1019 = vmatmul.mubr.f32.vlgmr.msra.gmra.mxu1 %v714_v44  ;;  %1094 = vmatmul.mubr.f32.vlgmr.msra.gmra.mxu0 %v716_v41  ;;  %v373_v38 = vpop.f32.mrf.mxu0  ;;  %v57_v41 = vsub.s32 4, %v2084_v19  ;;  %v842_v43 = vld [vmem:[%s2624_s3 + $0x330] sm:$0xff]  ;;  %v703_v44 = vmul.f32 0.01, %v2223_v29 }
  0xcf   :  { %1596 = vmatpush3.msra.mxu1 %v819_v45  ;;  %1634 = vmatpush3.msra.mxu0 %v851_v46  ;;  %v728_v40 = vmax.f32 %v2186_v6, %v702_v18  ;;  %v825_v45 = vld [vmem:[%s2624_s3 + $0x2a8] sm:$0xff]  ;;  %v65_v46 = vsub.s32 6, %v2084_v19  ;;  %v822_v6 = vld [vmem:[%s2624_s3 + $0x290] sm:$0xff] }
  0xd0   :  { %1597 = vmatprep.subr.mxu1 %v834_v47  ;;  %1635 = vmatprep.subr.mxu0 %v866_v48  ;;  %v727_v47 = vmax.f32 %v2195_v10, %v701_v31  ;;  %v2264_v48 = vadd.f32 %v373_v38, %v2239_v33  ;;  %v837_v31 = vld [vmem:[%s2624_s3 + $0x308] sm:$0xff] }
  0xd1   :  { %1598 = vmatpush3.msra.mxu1 %v818_v49  ;;  %1636 = vmatpush3.msra.mxu0 %v850_v50  ;;  %v809_v49 = vld [vmem:[%s2624_s3 + $0x228] sm:$0xff] }
  0xd2   :  { %1599 = vmatprep.subr.mxu1 %v833_v51  ;;  %1637 = vmatprep.subr.mxu0 %v865_v52  ;;  %v857_v50 = vld [vmem:[%s2624_s3 + $0x3a8] sm:$0xff]  ;;  %v450_v51 = vpop.f32.mrf.mxu1  ;;  %v730_v52 = vmax.f32 %v2211_v16, %v704_v35  ;;  %v838_v16 = vld [vmem:[%s2624_s3 + $0x310] sm:$0xff] }
  0xd3   :  { %1600 = vmatpush3.msra.mxu1 %v817_v54  ;;  %1638 = vmatpush3.msra.mxu0 %v849_v55  ;;  %v377_v54 = vpop.f32.mrf.mxu0  ;;  %v70_v55 = vrot.slane %v2091_v22, %v69_v39  ;;  %v899_v39 = vld [vmem:[%s2624_s3 + $0x4f8] sm:$0xff] }
  0xd4   :  { %1601 = vmatprep.subr.mxu1 %v832_v56  ;;  %1639 = vmatprep.subr.mxu0 %v864_v57  ;;  %v58_v56 = vrot.slane %v2091_v22, %v57_v41  ;;  %v841_v57 = vld [vmem:[%s2624_s3 + $0x328] sm:$0xff] }
  0xd5   :  { %1602 = vmatpush3.msra.mxu1 %v816_v58  ;;  %1640 = vmatpush3.msra.mxu0 %v848_v59  ;;  %v729_v58 = vmax.f32 %v2223_v29, %v703_v44  ;;  %v808_v59 = vld [vmem:[%s2624_s3 + $0x220] sm:$0xff]  ;;  %v931_v44 = vld [vmem:[%s2624_s3 + $0x5f8] sm:$0xff] }
  0xd6   :  { %1603 = vmatprep.subr.mxu1 %v831_v61  ;;  %1641 = vmatprep.subr.mxu0 %v863_v62  ;;  %v66_v61 = vrot.slane %v2091_v22, %v65_v46  ;;  %v693_v62 = vmul.f32 0.01, %v2264_v48  ;;  %v451_v22 = vadd.f32 %v450_v51, %v70_v55  ;;  %v378_v18 = vadd.f32 %v377_v54, %v58_v56  ;;  %v898_v46 = vld [vmem:[%s2624_s3 + $0x4f0] sm:$0xff] }
  0xd7   :  { %1604 = vmatpush3.msra.mxu1 %v815_v0  ;;  %1642 = vmatpush3.msra.mxu0 %v847_v1  ;;  %v454_v0 = vpop.f32.mrf.mxu1  ;;  %v840_v1 = vld [vmem:[%s2624_s3 + $0x320] sm:$0xff]  ;;  %v930_v51 = vld [vmem:[%s2624_s3 + $0x5f0] sm:$0xff] }
  0xd8   :  { %1605 = vmatprep.subr.mxu1 %v830_v2  ;;  %1643 = vmatprep.subr.mxu0 %v862_v3  ;;  %v807_v2 = vld [vmem:[%s2624_s3 + $0x218] sm:$0xff]  ;;  %v379_v3 = vpop.f32.mrf.mxu0  ;;  %v2308_v7 = vadd.f32 %v448_v34, %v66_v61  ;;  %v719_v10 = vmax.f32 %v2264_v48, %v693_v62  ;;  %v455_v35 = vadd.f32 %v454_v0, %v66_v61  ;;  %v705_v38 = vmul.f32 0.01, %v378_v18  ;;  %v914_v54 = vld [vmem:[%s2624_s3 + $0x570] sm:$0xff]  ;;  %v928_v61 = vld [vmem:[%s2624_s3 + $0x5e0] sm:$0xff] }
  0xd9   :  { %1606 = vmatpush3.msra.mxu1 %v814_v4  ;;  %1644 = vmatpush3.msra.mxu0 %v846_v5  ;;  %v372_v4 = vadd.f32 %v2213_v17, %v58_v56  ;;  %v855_v5 = vld [vmem:[%s2624_s3 + $0x398] sm:$0xff]  ;;  %v881_v56 = vld [vmem:[%s2624_s3 + $0x468] sm:$0xff] }
  0xda   :  { %1607 = vmatprep.subr.mxu1 %v829_v8  ;;  %1645 = vmatprep.subr.mxu0 %v861_v9  ;;  %v839_v8 = vld [vmem:[%s2624_s3 + $0x318] sm:$0xff]  ;;  %v806_v9 = vld [vmem:[%s2624_s3 + $0x210] sm:$0xff]  ;;  %v694_v29 = vmul.f32 0.01, %v2308_v7 }
  0xdb   :  { %1608 = vmatpush3.msra.mxu1 %v813_v11  ;;  %1646 = vmatpush3.msra.mxu0 %v845_v12  ;;  %v854_v11 = vld [vmem:[%s2624_s3 + $0x390] sm:$0xff]  ;;  %v380_v12 = vadd.f32 %v379_v3, %v2239_v33  ;;  %v692_v17 = vmul.f32 0.01, %v372_v4  ;;  %v852_v33 = vld [vmem:[%s2624_s3 + $0x380] sm:$0xff]  ;;  %v915_v48 = vld [vmem:[%s2624_s3 + $0x578] sm:$0xff] }
  0xdc   :  { %1609 = vmatprep.subr.mxu1 %v828_v14  ;;  %1647 = vmatprep.subr.mxu0 %v860_v15  ;;  %v456_v14 = vpop.f32.mrf.mxu1  ;;  %v695_v15 = vmul.f32 0.01, %v451_v22  ;;  %v895_v62 = vld [vmem:[%s2624_s3 + $0x4d8] sm:$0xff]  ;;  %v878_v3 = vld [vmem:[%s2624_s3 + $0x450] sm:$0xff] }
  0xdd   :  { %1610 = vmatpush3.msra.mxu1 %v812_v25  ;;  %1648 = vmatpush3.msra.mxu0 %v844_v27  ;;  %v805_v25 = vld [vmem:[%s2624_s3 + $0x208] sm:$0xff]  ;;  %v879_v0 = vld [vmem:[%s2624_s3 + $0x458] sm:$0xff] }
  0xde   :  { %1611 = vmatprep.subr.mxu1 %v827_v28  ;;  %1649 = vmatprep.subr.mxu0 %v859_v30  ;;  %v853_v27 = vld [vmem:[%s2624_s3 + $0x388] sm:$0xff]  ;;  %v457_v28 = vadd.f32 %v456_v14, %v70_v55  ;;  %v820_v30 = vld [vmem:[%s2624_s3 + $0x280] sm:$0xff]  ;;  %v721_v34 = vmax.f32 %v451_v22, %v695_v15  ;;  %v911_v22 = vld [vmem:[%s2624_s3 + $0x558] sm:$0xff] }
  0xdf   :  { %1612 = vmatpush3.msra.mxu1 %v811_v32  ;;  %1650 = vmatpush3.msra.mxu0 %v843_v26  ;;  %v706_v32 = vmul.f32 0.01, %v380_v12  ;;  %v804_v26 = vld [vmem:[%s2624_s3 + $0x200] sm:$0xff] }
  0xe0   :  { %1613 = vmatprep.subr.mxu1 %v826_v36  ;;  %1651 = vmatprep.subr.mxu0 %v858_v37  ;;  %v836_v36 = vld [vmem:[%s2624_s3 + $0x300] sm:$0xff]  ;;  %v718_v37 = vmax.f32 %v372_v4, %v692_v17  ;;  %v926_v4 = vld [vmem:[%s2624_s3 + $0x5d0] sm:$0xff] }
  0xe1   :  { %1614 = vmatpush3.msra.mxu1 %v810_v42  ;;  %1652 = vmatpush3.msra.mxu0 %v842_v43  ;;  %v708_v42 = vmul.f32 0.01, %v457_v28  ;;  %v883_v43 = vld [vmem:[%s2624_s3 + $0x478] sm:$0xff]  ;;  %v876_v14 = vld [vmem:[%s2624_s3 + $0x440] sm:$0xff] }
  0xe2   :  { %1615 = vmatprep.subr.mxu1 %v825_v45  ;;  %1023 = vmatprep.mubr.f32.mxu1 %v728_v40  ;;  %v720_v40 = vmax.f32 %v2308_v7, %v694_v29  ;;  %v732_v45 = vmax.f32 %v380_v12, %v706_v32  ;;  %v910_v7 = vld [vmem:[%s2624_s3 + $0x550] sm:$0xff]  ;;  %v892_v12 = vld [vmem:[%s2624_s3 + $0x4c0] sm:$0xff] }
  0xe3   :  { %1616 = vmatpush3.msra.mxu1 %v809_v49  ;;  %1653 = vmatprep.subr.mxu0 %v857_v50  ;;  %v731_v49 = vmax.f32 %v378_v18, %v705_v38  ;;  %v882_v50 = vld [vmem:[%s2624_s3 + $0x470] sm:$0xff]  ;;  %v924_v15 = vld [vmem:[%s2624_s3 + $0x5c0] sm:$0xff] }
  0xe4   :  { %1024 = vmatmul.mubr.f32.gmra.mxu1 %v727_v47  ;;  %1617 = vmatprep.subr.mxu1 %v824_v53  ;;  %v707_v47 = vmul.f32 0.01, %v455_v35  ;;  %v897_v53 = vld [vmem:[%s2624_s3 + $0x4e8] sm:$0xff]  ;;  %v874_v32 = vld [vmem:[%s2624_s3 + $0x430] sm:$0xff] }
  0xe5   :  { %1654 = vmatpush3.msra.mxu0 %v841_v57  ;;  %1098 = vmatprep.mubr.f32.mxu0 %v730_v52  ;;  %v734_v52 = vmax.f32 %v457_v28, %v708_v42  ;;  %v929_v57 = vld [vmem:[%s2624_s3 + $0x5e8] sm:$0xff]  ;;  %v923_v28 = vld [vmem:[%s2624_s3 + $0x5b8] sm:$0xff]  ;;  %v888_v42 = vld [vmem:[%s2624_s3 + $0x4a0] sm:$0xff] }
  0xe6   :  { %1618 = vmatpush3.msra.mxu1 %v808_v59  ;;  %1655 = vmatprep.subr.mxu0 %v856_v60  ;;  %v733_v55 = vmax.f32 %v455_v35, %v707_v47  ;;  %v913_v59 = vld [vmem:[%s2624_s3 + $0x568] sm:$0xff]  ;;  %v880_v60 = vld [vmem:[%s2624_s3 + $0x460] sm:$0xff]  ;;  %v906_v35 = vld [vmem:[%s2624_s3 + $0x530] sm:$0xff] }
  0xe7   :  { %1099 = vmatmul.mubr.f32.gmra.mxu0 %v729_v58  ;;  %1619 = vmatprep.subr.mxu1 %v823_v63  ;;  %v896_v58 = vld [vmem:[%s2624_s3 + $0x4e0] sm:$0xff] }
  0xe8   :  { %1656 = vmatpush3.msra.mxu0 %v840_v1  ;;  %1620 = vmatpush3.msra.mxu1 %v807_v2  ;;  %v912_v63 = vld [vmem:[%s2624_s3 + $0x560] sm:$0xff]  ;;  %v927_v1 = vld [vmem:[%s2624_s3 + $0x5d8] sm:$0xff]  ;;  %v894_v2 = vld [vmem:[%s2624_s3 + $0x4d0] sm:$0xff] }
  0xe9   :  { %1657 = vmatprep.subr.mxu0 %v855_v5  ;;  %1621 = vmatprep.subr.mxu1 %v822_v6  ;;  %v893_v5 = vld [vmem:[%s2624_s3 + $0x4c8] sm:$0xff]  ;;  %v2422_v6 = vpop.f32.mrf.mxu0 }
  0xea   :  { %1658 = vmatpush3.msra.mxu0 %v839_v8  ;;  %1622 = vmatpush3.msra.mxu1 %v806_v9  ;;  %v877_v8 = vld [vmem:[%s2624_s3 + $0x448] sm:$0xff] }
  0xeb   :  { %1659 = vmatprep.subr.mxu0 %v854_v11  ;;  %1623 = vmatprep.subr.mxu1 %v821_v13  ;;  %v2433_v9 = vld [vmem:[%s2625_s2 + $0x8] sm:$0x1f]  ;;  %v527_v18 = vpop.f32.mrf.mxu0 }
  0xec   :  { %1168 = vmatprep.mubr.f32.mxu1 %v719_v10  ;;  %1660 = vmatpush3.msra.mxu0 %v838_v16  ;;  %v2435_v10 = vpop.f32.mrf.mxu1  ;;  %v925_v11 = vld [vmem:[%s2624_s3 + $0x5c8] sm:$0xff]  ;;  %v891_v16 = vld [vmem:[%s2624_s3 + $0x4b8] sm:$0xff]  ;;  %v78_v17 = vrot.slane %v2433_v9, %v45_v23  ;;  %v890_v23 = vld [vmem:[%s2624_s3 + $0x4b0] sm:$0xff] }
  0xed   :  { %1624 = vmatpush3.msra.mxu1 %v805_v25  ;;  %1661 = vmatprep.subr.mxu0 %v853_v27  ;;  %v909_v13 = vld [vmem:[%s2624_s3 + $0x548] sm:$0xff]  ;;  %v908_v25 = vld [vmem:[%s2624_s3 + $0x540] sm:$0xff]  ;;  %v875_v27 = vld [vmem:[%s2624_s3 + $0x438] sm:$0xff] }
  0xee   :  { %1625 = vmatprep.subr.mxu1 %v820_v30  ;;  %1662 = vmatpush3.msra.mxu0 %v837_v31  ;;  %v604_v29 = vpop.f32.mrf.mxu1  ;;  %v531_v30 = vpop.f32.mrf.mxu0  ;;  %v907_v31 = vld [vmem:[%s2624_s3 + $0x538] sm:$0xff] }
  0xef   :  { %1626 = vmatpush3.msra.mxu1 %v804_v26  ;;  %1663 = vmatprep.subr.mxu0 %v852_v33  ;;  %v922_v26 = vld [vmem:[%s2624_s3 + $0x5b0] sm:$0xff]  ;;  %v889_v33 = vld [vmem:[%s2624_s3 + $0x4a8] sm:$0xff] }
  0xf0   :  { %1169 = vmatmul.mubr.f32.vlgmr.msra.gmra.mxu1 %v718_v37  ;;  %1664 = vmatpush3.msra.mxu0 %v836_v36  ;;  %v873_v36 = vld [vmem:[%s2624_s3 + $0x428] sm:$0xff]  ;;  %v86_v37 = vrot.slane %v2433_v9, %v53_v24  ;;  %v608_v38 = vpop.f32.mrf.mxu1  ;;  %v533_v24 = vpop.f32.mrf.mxu0 }
  0xf1   :  { %1671 = vmatprep.subr.mxu1 %v899_v39  ;;  %1243 = vmatprep.mubr.f32.mxu0 %v721_v34  ;;  %v2482_v34 = vadd.f32 %v527_v18, %v78_v17  ;;  %v74_v39 = vrot.slane %v2433_v9, %v41_v20  ;;  %v905_v20 = vld [vmem:[%s2624_s3 + $0x528] sm:$0xff] }
  0xf2   :  { %1672 = vmatpush3.msra.mxu1 %v883_v43  ;;  %1709 = vmatprep.subr.mxu0 %v931_v44  ;;  %v82_v43 = vrot.slane %v2433_v9, %v49_v21  ;;  %v872_v44 = vld [vmem:[%s2624_s3 + $0x420] sm:$0xff]  ;;  %v887_v21 = vld [vmem:[%s2624_s3 + $0x498] sm:$0xff]  ;;  %v2518_v47 = vpop.f32.mrf.mxu0 }
  0xf3   :  { %1244 = vmatmul.mubr.f32.vlgmr.msra.gmra.mxu0 %v720_v40  ;;  %1673 = vmatprep.subr.mxu1 %v898_v46  ;;  %v921_v40 = vld [vmem:[%s2624_s3 + $0x5a8] sm:$0xff]  ;;  %v920_v46 = vld [vmem:[%s2624_s3 + $0x5a0] sm:$0xff]  ;;  %v532_v19 = vadd.f32 %v531_v30, %v74_v39 }
  0xf4   :  { %1710 = vmatpush3.msra.mxu0 %v915_v48  ;;  %1173 = vmatprep.mubr.f32.mxu1 %v732_v45  ;;  %v697_v45 = vmul.f32 0.01, %v2482_v34  ;;  %v904_v48 = vld [vmem:[%s2624_s3 + $0x520] sm:$0xff] }
  0xf5   :  { %1674 = vmatpush3.msra.mxu1 %v882_v50  ;;  %1711 = vmatprep.subr.mxu0 %v930_v51  ;;  %v871_v50 = vld [vmem:[%s2624_s3 + $0x418] sm:$0xff]  ;;  %v610_v51 = vpop.f32.mrf.mxu1 }
  0xf6   :  { %1174 = vmatmul.mubr.f32.gmra.mxu1 %v731_v49  ;;  %1675 = vmatprep.subr.mxu1 %v897_v53  ;;  %v2523_v49 = vadd.f32 %v604_v29, %v86_v37  ;;  %v2530_v53 = vadd.f32 %v2435_v10, %v82_v43 }
  0xf7   :  { %1712 = vmatpush3.msra.mxu0 %v914_v54  ;;  %1248 = vmatprep.mubr.f32.mxu0 %v734_v52  ;;  %v526_v52 = vadd.f32 %v2422_v6, %v74_v39  ;;  %v919_v54 = vld [vmem:[%s2624_s3 + $0x598] sm:$0xff]  ;;  %v932_v39 = vld [vmem:[%s2624_s3 + $0x600] sm:$0xff] }
  0xf8   :  { %1676 = vmatpush3.msra.mxu1 %v881_v56  ;;  %1713 = vmatprep.subr.mxu0 %v929_v57  ;;  %v903_v56 = vld [vmem:[%s2624_s3 + $0x518] sm:$0xff]  ;;  %v870_v57 = vld [vmem:[%s2624_s3 + $0x410] sm:$0xff] }
  0xf9   :  { %1249 = vmatmul.mubr.f32.gmra.mxu0 %v733_v55  ;;  %1677 = vmatprep.subr.mxu1 %v896_v58  ;;  %v886_v55 = vld [vmem:[%s2624_s3 + $0x490] sm:$0xff]  ;;  %v534_v58 = vadd.f32 %v533_v24, %v78_v17 }
  0xfa   :  { %1714 = vmatpush3.msra.mxu0 %v913_v59  ;;  %1678 = vmatpush3.msra.mxu1 %v880_v60  ;;  %v2547_v59 = vrot.slane %v2433_v9, %v57_v41  ;;  %v723_v60 = vmax.f32 %v2482_v34, %v697_v45  ;;  %v902_v41 = vld [vmem:[%s2624_s3 + $0x510] sm:$0xff]  ;;  %v935_v34 = vld [vmem:[%s2624_s3 + $0x618] sm:$0xff] }
  0xfb   :  { %1715 = vmatprep.subr.mxu0 %v928_v61  ;;  %1679 = vmatprep.subr.mxu1 %v895_v62  ;;  %v918_v61 = vld [vmem:[%s2624_s3 + $0x590] sm:$0xff]  ;;  %v885_v62 = vld [vmem:[%s2624_s3 + $0x488] sm:$0xff]  ;;  %v710_v6 = vmul.f32 0.01, %v534_v58 }
  0xfc   :  { %1716 = vmatpush3.msra.mxu0 %v912_v63  ;;  %1680 = vmatpush3.msra.mxu1 %v879_v0  ;;  %v611_v63 = vadd.f32 %v610_v51, %v86_v37  ;;  %v679_v0 = vpop.f32.mrf.mxu0  ;;  %v933_v37 = vld [vmem:[%s2624_s3 + $0x608] sm:$0xff] }
  0xfd   :  { %1717 = vmatprep.subr.mxu0 %v927_v1  ;;  %1681 = vmatprep.subr.mxu1 %v894_v2  ;;  %v699_v1 = vmul.f32 0.01, %v2523_v49  ;;  %v696_v2 = vmul.f32 0.01, %v526_v52  ;;  %v680_v9 = vadd.f32 %v679_v0, %v2547_v59 }
  0xfe   :  { %1718 = vmatpush3.msra.mxu0 %v911_v22  ;;  %1682 = vmatpush3.msra.mxu1 %v878_v3  ;;  %v698_v22 = vmul.f32 0.01, %v2530_v53  ;;  %v609_v3 = vadd.f32 %v608_v38, %v82_v43  ;;  %v712_v10 = vmul.f32 0.01, %v611_v63 }
  0xff   :  { %1719 = vmatprep.subr.mxu0 %v926_v4  ;;  %1683 = vmatprep.subr.mxu1 %v893_v5  ;;  %v869_v4 = vld [vmem:[%s2624_s3 + $0x408] sm:$0xff]  ;;  %v700_v29 = vmul.f32 0.01, %v680_v9 }
 0x100   :  { %1720 = vmatpush3.msra.mxu0 %v910_v7  ;;  %1684 = vmatpush3.msra.mxu1 %v877_v8  ;;  %v917_v5 = vld [vmem:[%s2624_s3 + $0x588] sm:$0xff]  ;;  %v884_v7 = vld [vmem:[%s2624_s3 + $0x480] sm:$0xff]  ;;  %v724_v17 = vmax.f32 %v2530_v53, %v698_v22  ;;  %v711_v18 = vmul.f32 0.01, %v609_v3 }
 0x101   :  { %1721 = vmatprep.subr.mxu0 %v925_v11  ;;  %1685 = vmatprep.subr.mxu1 %v892_v12  ;;  %v901_v8 = vld [vmem:[%s2624_s3 + $0x508] sm:$0xff]  ;;  %v868_v11 = vld [vmem:[%s2624_s3 + $0x400] sm:$0xff] }
 0x102   :  { %1722 = vmatpush3.msra.mxu0 %v909_v13  ;;  %1686 = vmatpush3.msra.mxu1 %v876_v14  ;;  %v916_v12 = vld [vmem:[%s2624_s3 + $0x580] sm:$0xff]  ;;  %v725_v13 = vmax.f32 %v2523_v49, %v699_v1  ;;  %v709_v14 = vmul.f32 0.01, %v532_v19 }
 0x103   :  { %1723 = vmatprep.subr.mxu0 %v924_v15  ;;  %1687 = vmatprep.subr.mxu1 %v891_v16  ;;  %v900_v15 = vld [vmem:[%s2624_s3 + $0x500] sm:$0xff]  ;;  %v722_v16 = vmax.f32 %v526_v52, %v696_v2 }
 0x104   :  { %1724 = vmatpush3.msra.mxu0 %v908_v25  ;;  %1688 = vmatpush3.msra.mxu1 %v875_v27  ;;  %v939_v25 = vld [vmem:[%s2624_s3 + $0x638] sm:$0xff]  ;;  %v736_v27 = vmax.f32 %v534_v58, %v710_v6  ;;  %v735_v30 = vmax.f32 %v532_v19, %v709_v14 }
 0x105   :  { %1725 = vmatprep.subr.mxu0 %v923_v28  ;;  %1689 = vmatprep.subr.mxu1 %v890_v23  ;;  %v738_v28 = vmax.f32 %v611_v63, %v712_v10  ;;  %v938_v23 = vld [vmem:[%s2624_s3 + $0x630] sm:$0xff] }
 0x106   :  { %1726 = vmatpush3.msra.mxu0 %v907_v31  ;;  %1690 = vmatpush3.msra.mxu1 %v874_v32  ;;  %v737_v31 = vmax.f32 %v609_v3, %v711_v18  ;;  %v937_v32 = vld [vmem:[%s2624_s3 + $0x628] sm:$0xff] }
 0x107   :  { %1727 = vmatprep.subr.mxu0 %v922_v26  ;;  %1691 = vmatprep.subr.mxu1 %v889_v33  ;;  %v726_v26 = vmax.f32 %v680_v9, %v700_v29  ;;  %v936_v33 = vld [vmem:[%s2624_s3 + $0x620] sm:$0xff] }
 0x108   :  { %1728 = vmatpush3.msra.mxu0 %v906_v35  ;;  %1692 = vmatpush3.msra.mxu1 %v873_v36  ;;  %v685_v35 = vadd.f32 %v2518_v47, %v2547_v59  ;;  %v934_v36 = vld [vmem:[%s2624_s3 + $0x610] sm:$0xff] }
 0x109   :  { %1729 = vmatprep.subr.mxu0 %v921_v40  ;;  %1693 = vmatprep.subr.mxu1 %v888_v42 }
 0x10a   :  { %1730 = vmatpush3.msra.mxu0 %v905_v20  ;;  %1694 = vmatpush3.msra.mxu1 %v872_v44  ;;  %v713_v38 = vmul.f32 0.01, %v685_v35 }
 0x10b   :  { %1731 = vmatprep.subr.mxu0 %v920_v46  ;;  %1695 = vmatprep.subr.mxu1 %v887_v21 }
 0x10c   :  { %1732 = vmatpush3.msra.mxu0 %v904_v48  ;;  %1696 = vmatpush3.msra.mxu1 %v871_v50  ;;  %v739_v40 = vmax.f32 %v685_v35, %v713_v38 }
 0x10d   :  { %1733 = vmatprep.subr.mxu0 %v919_v54  ;;  %1697 = vmatprep.subr.mxu1 %v886_v55 }
 0x10e   :  { %1734 = vmatpush3.msra.mxu0 %v903_v56  ;;  %1698 = vmatpush3.msra.mxu1 %v870_v57  ;;  %v1513_v56 = vld [vmem:[%s2626_s4] ss:$0 sm:$0xff] }
 0x10f   :  { %1735 = vmatprep.subr.mxu0 %v918_v61  ;;  %1699 = vmatprep.subr.mxu1 %v885_v62 }
 0x110   :  { %1318 = vmatprep.mubr.f32.mxu1 %v723_v60  ;;  %1736 = vmatpush3.msra.mxu0 %v902_v41 }
 0x111   :  { %1700 = vmatpush3.msra.mxu1 %v869_v4  ;;  %1737 = vmatprep.subr.mxu0 %v917_v5 }
 0x112   :  { %1701 = vmatprep.subr.mxu1 %v884_v7  ;;  %1738 = vmatpush3.msra.mxu0 %v901_v8 }
 0x113   :  { %1702 = vmatpush3.msra.mxu1 %v868_v11  ;;  %1739 = vmatprep.subr.mxu0 %v916_v12 }
 0x114   :  { %1319 = vmatmul.mubr.f32.vlgmr.msra.gmra.mxu1 %v722_v16  ;;  %1740 = vmatpush3.msra.mxu0 %v900_v15 }
 0x115   :  { %1393 = vmatprep.mubr.f32.mxu0 %v725_v13  ;;  %1762 = vmatprep.subr.mxu1 %v939_v25 }
 0x116   :  { %1394 = vmatmul.mubr.f32.vlgmr.msra.gmra.mxu0 %v724_v17  ;;  %1763 = vmatpush3.msra.mxu1 %v939_v25 }
 0x117   :  { %1764 = vmatprep.subr.mxu1 %v938_v23  ;;  %1323 = vmatprep.mubr.f32.mxu1 %v736_v27 }
 0x118   :  { %1765 = vmatpush3.msra.mxu1 %v938_v23  ;;  %1398 = vmatprep.mubr.f32.mxu0 %v738_v28 }
 0x119   :  { %1324 = vmatmul.mubr.f32.gmra.mxu1 %v735_v30  ;;  %1766 = vmatprep.subr.mxu1 %v937_v32 }
 0x11a   :  { %1399 = vmatmul.mubr.f32.gmra.mxu0 %v737_v31  ;;  %1767 = vmatpush3.msra.mxu1 %v937_v32 }
 0x11b   :  { %1768 = vmatprep.subr.mxu1 %v936_v33  ;;  %1778 = vmatprep.mubr.msk.f32.mxu1 %vm947_vm2, %v726_v26 }
 0x11c   :  { %1769 = vmatpush3.msra.mxu1 %v936_v33 }
 0x11d   :  { %1770 = vmatprep.subr.mxu1 %v935_v34 }
 0x11e   :  { %1771 = vmatpush3.msra.mxu1 %v935_v34 }
 0x11f   :  { %1772 = vmatprep.subr.mxu1 %v934_v36 }
 0x120   :  { %1773 = vmatpush3.msra.mxu1 %v934_v36 }
 0x121   :  { %1774 = vmatprep.subr.mxu1 %v933_v37 }
 0x122   :  { %1775 = vmatpush3.msra.mxu1 %v933_v37 }
 0x123   :  { %1776 = vmatprep.subr.mxu1 %v932_v39 }
 0x124   :  { %1777 = vmatpush3.msra.mxu1 %v932_v39 }
 0x125   :  { %1779 = vmatmul.mubr.msk.f32.vlgmr.msra.gmra.mxu1 %vm947_vm2, %v739_v40 }
 0x18e   :  { %v1551_v42 = vpop.f32.mrf.mxu1  ;;  %v1589_v43 = vpop.f32.mrf.mxu0 }
 0x190   :  { %v1552_v24 = vpop.f32.mrf.mxu1  ;;  %v1590_v20 = vpop.f32.mrf.mxu0 }
 0x191   :  { %v1553_v54 = vadd.f32 %v1552_v24, %v1551_v42  ;;  %v1591_v62 = vadd.f32 %v1590_v20, %v1589_v43 }
 0x193   :  { %v1021_v61 = vadd.f32 %v1553_v54, %v1513_v56 }
 0x195   :  { %v1096_v3 = vadd.f32 %v1591_v62, %v1021_v61 }
 0x1a4   :  { %v1554_v44 = vpop.f32.mrf.mxu1 }
 0x1a6   :  { %v1555_v46 = vpop.f32.mrf.mxu1 }
 0x1a7   :  { %v1592_v45 = vpop.f32.mrf.mxu0  ;;  %v1556_v52 = vadd.f32 %v1555_v46, %v1554_v44 }
 0x1a9   :  { %v1593_v21 = vpop.f32.mrf.mxu0  ;;  %v1026_v57 = vadd.f32 %v1556_v52, %v1513_v56 }
 0x1aa   :  { %v1594_v58 = vadd.f32 %v1593_v21, %v1592_v45 }
 0x1ac   :  { %v1101_v19 = vadd.f32 %v1594_v58, %v1026_v57 }
 0x1b0   :  { %v1627_v47 = vpop.f32.mrf.mxu1 }
 0x1b2   :  { %v1628_v49 = vpop.f32.mrf.mxu1 }
 0x1b3   :  { %v1665_v48 = vpop.f32.mrf.mxu0  ;;  %v1629_v41 = vadd.f32 %v1628_v49, %v1627_v47 }
 0x1b5   :  { %v1666_v50 = vpop.f32.mrf.mxu0  ;;  %v1171_v8 = vadd.f32 %v1629_v41, %v1096_v3 }
 0x1b6   :  { %v1630_v51 = vpop.f32.mrf.mxu1  ;;  %v1667_v9 = vadd.f32 %v1666_v50, %v1665_v48 }
 0x1b8   :  { %v1631_v55 = vpop.f32.mrf.mxu1  ;;  %v1246_v14 = vadd.f32 %v1667_v9, %v1171_v8 }
 0x1b9   :  { %v1668_v53 = vpop.f32.mrf.mxu0  ;;  %v1632_v63 = vadd.f32 %v1631_v55, %v1630_v51 }
 0x1bb   :  { %v1669_v59 = vpop.f32.mrf.mxu0  ;;  %v1176_v4 = vadd.f32 %v1632_v63, %v1101_v19 }
 0x1bc   :  { %v1670_v5 = vadd.f32 %v1669_v59, %v1668_v53 }
 0x1be   :  { %v1251_v12 = vadd.f32 %v1670_v5, %v1176_v4 }
 0x1d4   :  { %v1703_v60 = vpop.f32.mrf.mxu1 }
 0x1d6   :  { %v1741_v0 = vpop.f32.mrf.mxu0  ;;  %v1704_v1 = vpop.f32.mrf.mxu1 }
 0x1d7   :  { %v1705_v13 = vadd.f32 %v1704_v1, %v1703_v60 }
 0x1d8   :  { %v1742_v2 = vpop.f32.mrf.mxu0 }
 0x1d9   :  { %v1706_v22 = vpop.f32.mrf.mxu1  ;;  %v1321_v17 = vadd.f32 %v1705_v13, %v1246_v14  ;;  %v1743_v18 = vadd.f32 %v1742_v2, %v1741_v0 }
 0x1da   :  { %v1744_v6 = vpop.f32.mrf.mxu0 }
 0x1db   :  { %v1707_v7 = vpop.f32.mrf.mxu1  ;;  %v1396_v28 = vadd.f32 %v1743_v18, %v1321_v17 }
 0x1dc   :  { %v1708_v10 = vadd.f32 %v1707_v7, %v1706_v22  ;;  %v1745_v11 = vpop.f32.mrf.mxu0 }
 0x1dd   :  { %v1746_v16 = vadd.f32 %v1745_v11, %v1744_v6 }
 0x1de   :  { %v1326_v15 = vadd.f32 %v1708_v10, %v1251_v12 }
 0x1e0   :  { %v1401_v25 = vadd.f32 %v1746_v16, %v1326_v15 }
 0x1e5   :  { %v1780_v27 = vpop.f32.mrf.mxu1 }
 0x1e6   :  { %v1476_v29 = vadd.f32 %v1780_v27, %v1401_v25 }
 0x1e7   :  { %v1470_v23 = vpop.f32.mrf.mxu1 }
 0x1e8   :  { %1481 = vst.msk [vmem:[%s2627_s5 + $0x8] sm:$0xff] %vm1479_vm3, %v1476_v29  ;;  %v1471_v30 = vadd.f32 %v1470_v23, %v1396_v28 }
 0x1ea   :  { %1480 = vst.msk [vmem:[%s2627_s5] sm:$0xff] %vm1479_vm3, %v1471_v30 }

</bundles_post_ra>
